<compile_context>
chip_gen: v6e
topology: v6e:2x2x1
jax: 0.10.0
libtpu: 0.0.40
codegen_flags: <defaults>
</compile_context>

<pallas_src>
import functools

import jax
import jax.numpy as jnp
import numpy as np
from jax.experimental import pallas as pl
from jax.experimental.pallas import tpu as pltpu

EPS = 1e-5          # PyTorch nn.LayerNorm default
NEG_MASK = -1e30    # large finite mask value (robust even for fully-masked rows)


def _layernorm(x, gamma, beta):
    mean = jnp.mean(x, axis=-1, keepdims=True)
    var = jnp.mean((x - mean) ** 2, axis=-1, keepdims=True)   # biased, like PyTorch
    return (x - mean) * jax.lax.rsqrt(var + EPS) * gamma + beta


# ---------------------------------------------------------------------------
# Fused kernel: QKV proj -> causal MHA (batched over (b,h)) -> out proj
#               -> +res -> LN1 -> Linear -> ReLU -> Linear -> +res -> LN2
# Single invocation: all activations / weights VMEM-resident for the whole call.
# ---------------------------------------------------------------------------
def sa_block_kernel(x_ref, wqkv_ref, wprojg_ref, bproj_ref, g1_ref, b1_ref,
                    wfc1_ref, bfc1_ref, wfc2_ref, bfc2_ref, g2_ref, b2_ref,
                    o_ref, qkv_scr, y_scr, *, batch, seq, n_head, head_size):
    B, T, H, hs = batch, seq, n_head, head_size
    x = x_ref[...]                                   # (B*T, C)
    scale = hs ** -0.5

    # ---- fused QKV projection: one MXU matmul, M = B*T, N = 3C ---------------
    qkv = jnp.dot(x, wqkv_ref[...], preferred_element_type=jnp.float32)  # (B*T, 3C)

    # ---- head/batch relayout: G = B*H merged attention-batch, g = b*H + h ----
    # wqkv columns are packed per-head as [q_h | k_h | v_h], so each (b, h) pair
    # is one tile-aligned (T, 3*hs) slice copy (8 copies total).
    for b in range(B):
        for h in range(H):
            qkv_scr[b * H + h] = qkv[b * T:(b + 1) * T,
                                     h * 3 * hs:(h + 1) * 3 * hs]

    qkv_g = qkv_scr[...]                             # (G, T, 3*hs)
    q = qkv_g[:, :, 0:hs]
    k = qkv_g[:, :, hs:2 * hs]
    v = qkv_g[:, :, 2 * hs:3 * hs]

    # ---- causal softmax attention, batched over (batch, head) ----------------
    att = jnp.einsum('gtd,gsd->gts', q, k,
                     preferred_element_type=jnp.float32) * scale         # (G, T, T)
    row = jax.lax.broadcasted_iota(jnp.int32, (T, T), 0)   # built once per call
    col = jax.lax.broadcasted_iota(jnp.int32, (T, T), 1)
    att = jnp.where((col <= row)[None], att, NEG_MASK)
    att = att - jnp.max(att, axis=-1, keepdims=True)
    p = jnp.exp(att)
    p = p / jnp.sum(p, axis=-1, keepdims=True)       # exact softmax (per review)
    # TODO(synk): attention-prob dropout is eval-mode identity here.
    ctx = jnp.einsum('gts,gsd->gtd', p, v,
                     preferred_element_type=jnp.float32)                 # (G, T, hs)

    # ---- output projection with head-concat folded into the contraction ------
    # wprojg[g] = wproj rows for head h (g = b*H + h), shape (hs, C).
    part = jnp.einsum('gtd,gdc->gtc', ctx, wprojg_ref[...],
                      preferred_element_type=jnp.float32)                # (G, T, C)
    for b in range(B):
        acc = part[b * H]
        for h in range(1, H):
            acc = acc + part[b * H + h]              # sum over heads (VPU adds)
        y_scr[b * T:(b + 1) * T, :] = acc
    y = y_scr[...] + bproj_ref[0]
    # TODO(synk): projection dropout is eval-mode identity here.

    x1 = _layernorm(x + y, g1_ref[0], b1_ref[0])

    # ---- FeedForward: Linear -> ReLU -> Linear --------------------------------
    hdn = jnp.dot(x1, wfc1_ref[...], preferred_element_type=jnp.float32) + bfc1_ref[0]
    hdn = jnp.maximum(hdn, 0.0)
    y2 = jnp.dot(hdn, wfc2_ref[...], preferred_element_type=jnp.float32) + bfc2_ref[0]
    # TODO(synk): FFN dropout is eval-mode identity here.

    o_ref[...] = _layernorm(x1 + y2, g2_ref[0], b2_ref[0])


# ---------------------------------------------------------------------------
# Wrapper
# ---------------------------------------------------------------------------
def self_attention_block(x, params, *, n_head):
    B, T, C = x.shape
    hs = C // n_head

    x2 = x.reshape(B * T, C)      # row-flatten in the wrapper (free, outside kernel)

    kernel = functools.partial(sa_block_kernel, batch=B, seq=T,
                               n_head=n_head, head_size=hs)

    out2 = pl.pallas_call(
        kernel,
        out_shape=jax.ShapeDtypeStruct((B * T, C), jnp.float32),
        # No grid: one invocation for the whole batch (per review item 1).
        # All operands are small and land in VMEM as full blocks.
        scratch_shapes=[
            pltpu.VMEM((B * n_head, T, 3 * hs), jnp.float32),  # (g, T, [q|k|v])
            pltpu.VMEM((B * T, C), jnp.float32),               # attention output rows
        ],
        # TODO(synk): at production sizes add pltpu.CompilerParams(
        #   vmem_limit_bytes=...) and a 'parallel' row-tile grid for v7x.
    )(x2, params["wqkv"], params["wproj_g"], params["bproj"],
      params["g1"], params["b1"], params["w_fc1"], params["b_fc1"],
      params["w_fc2"], params["b_fc2"], params["g2"], params["b2"])

    return out2.reshape(B, T, C)


def pack_qkv_interleaved(wq, wk, wv):
    """(H, C, hs) per-head weights -> (C, 3C) with per-head [q|k|v] column blocks."""
    H = wq.shape[0]
    blocks = [jnp.concatenate([wq[h], wk[h], wv[h]], axis=1) for h in range(H)]
    return jnp.concatenate(blocks, axis=1)


def split_wproj(wproj, n_head, head_size, batch):
    """(C, C) projection -> (B*H, hs, C): per-head row blocks, tiled over batch
    so the merged attention-batch index g = b*H + h selects the right slice."""
    wr = wproj.reshape(n_head, head_size, wproj.shape[1])
    return jnp.tile(wr, (batch, 1, 1))


# ---------------------------------------------------------------------------
# Pure-JAX reference (mirrors the PyTorch module, per-head weights)
# ---------------------------------------------------------------------------
def reference_forward(x, raw, *, n_head):
    B, T, C = x.shape
    hs = C // n_head
    causal = jnp.tril(jnp.ones((T, T), dtype=bool))
    heads = []
    for h in range(n_head):
        q = x @ raw["wq"][h]
        k = x @ raw["wk"][h]
        v = x @ raw["wv"][h]
        att = (q @ jnp.swapaxes(k, -1, -2)) * hs ** -0.5
        att = jnp.where(causal, att, -jnp.inf)
        att = jax.nn.softmax(att, axis=-1)
        heads.append(att @ v)
    y = jnp.concatenate(heads, axis=-1) @ raw["wproj"] + raw["bproj"][0]
    x1 = _layernorm(x + y, raw["g1"][0], raw["b1"][0])
    hdn = jax.nn.relu(x1 @ raw["w_fc1"] + raw["b_fc1"][0])
    y2 = hdn @ raw["w_fc2"] + raw["b_fc2"][0]
    return _layernorm(x1 + y2, raw["g2"][0], raw["b2"][0])


# ---------------------------------------------------------------------------
# Main
# ---------------------------------------------------------------------------
if __name__ == "__main__":
    B, T, C, n_head = 2, 8, 32, 4          # block_size=8, n_embed=32, head_size=8
    hs, hidden = C // n_head, 4 * C

    key = jax.random.PRNGKey(0)
    ks = jax.random.split(key, 10)
    s = 0.02
    raw = {
        "wq": jax.random.normal(ks[0], (n_head, C, hs), jnp.float32) * s,
        "wk": jax.random.normal(ks[1], (n_head, C, hs), jnp.float32) * s,
        "wv": jax.random.normal(ks[2], (n_head, C, hs), jnp.float32) * s,
        "wproj": jax.random.normal(ks[3], (C, C), jnp.float32) * s,
        "bproj": jax.random.normal(ks[4], (1, C), jnp.float32) * s,
        "g1": jnp.ones((1, C), jnp.float32),
        "b1": jnp.zeros((1, C), jnp.float32),
        "w_fc1": jax.random.normal(ks[5], (C, hidden), jnp.float32) * s,
        "b_fc1": jax.random.normal(ks[6], (1, hidden), jnp.float32) * s,
        "w_fc2": jax.random.normal(ks[7], (hidden, C), jnp.float32) * s,
        "b_fc2": jax.random.normal(ks[8], (1, C), jnp.float32) * s,
        "g2": jnp.ones((1, C), jnp.float32),
        "b2": jnp.zeros((1, C), jnp.float32),
    }
    params = dict(raw)
    params["wqkv"] = pack_qkv_interleaved(raw["wq"], raw["wk"], raw["wv"])
    params["wproj_g"] = split_wproj(raw["wproj"], n_head, hs, B)

    x = jax.random.normal(ks[9], (B, T, C), jnp.float32)

    out = jax.block_until_ready(self_attention_block(x, params, n_head=n_head))
    ref = reference_forward(x, raw, n_head=n_head)

    # Softmax is now exact (no approx reciprocal); remaining tolerance covers
    # in-kernel MXU vs. XLA-reference f32 matmul precision differences.
    np.testing.assert_allclose(np.asarray(out), np.asarray(ref), atol=2e-3, rtol=2e-3)

    print("KERNEL_OK")
</pallas_src>

<mosaic_0001>
module attributes {stable_mosaic.version = 11 : i64} {
  func.func @sa_block_kernel(%arg0: memref<16x32xf32, #tpu.memory_space<vmem>>, %arg1: memref<32x96xf32, #tpu.memory_space<vmem>>, %arg2: memref<8x8x32xf32, #tpu.memory_space<vmem>>, %arg3: memref<1x32xf32, #tpu.memory_space<vmem>>, %arg4: memref<1x32xf32, #tpu.memory_space<vmem>>, %arg5: memref<1x32xf32, #tpu.memory_space<vmem>>, %arg6: memref<32x128xf32, #tpu.memory_space<vmem>>, %arg7: memref<1x128xf32, #tpu.memory_space<vmem>>, %arg8: memref<128x32xf32, #tpu.memory_space<vmem>>, %arg9: memref<1x32xf32, #tpu.memory_space<vmem>>, %arg10: memref<1x32xf32, #tpu.memory_space<vmem>>, %arg11: memref<1x32xf32, #tpu.memory_space<vmem>>, %arg12: memref<16x32xf32, #tpu.memory_space<vmem>>, %arg13: memref<8x8x24xf32, #tpu.memory_space<vmem>>, %arg14: memref<16x32xf32, #tpu.memory_space<vmem>>) attributes {dimension_semantics = [], scalar_prefetch = 0 : i64, scratch_operands = 2 : i64, tpu.core_type = #tpu.core_type<tc>} {
    %c0 = arith.constant 0 : index
    %c0_0 = arith.constant 0 : index
    %0 = vector.load %arg0[%c0, %c0_0] : memref<16x32xf32, #tpu.memory_space<vmem>>, vector<16x32xf32>
    %c0_1 = arith.constant 0 : index
    %c0_2 = arith.constant 0 : index
    %1 = vector.load %arg1[%c0_1, %c0_2] : memref<32x96xf32, #tpu.memory_space<vmem>>, vector<32x96xf32>
    %cst = arith.constant dense<0.000000e+00> : vector<16x96xf32>
    %2 = tpu.matmul %0, %1, %cst {dimension_numbers = #tpu.dot_dimension_numbers<[1], [0], [0], [1], [0, 0, 1, 1], [], []>} : vector<16x32xf32>, vector<32x96xf32>, vector<16x96xf32> -> vector<16x96xf32>
    %3 = vector.extract_strided_slice %2 {offsets = [0, 0], sizes = [8, 24], strides = [1, 1]} : vector<16x96xf32> to vector<8x24xf32>
    %c0_3 = arith.constant 0 : index
    %c0_4 = arith.constant 0 : index
    %c0_5 = arith.constant 0 : index
    %4 = vector.load %arg13[%c0_3, %c0_4, %c0_5] : memref<8x8x24xf32, #tpu.memory_space<vmem>>, vector<1x8x24xf32>
    %5 = vector.shape_cast %4 : vector<1x8x24xf32> to vector<8x24xf32>
    %6 = vector.shape_cast %3 : vector<8x24xf32> to vector<1x8x24xf32>
    tpu.vector_store %arg13[%c0_3, %c0_4, %c0_5], %6 {strides = array<i32>} : memref<8x8x24xf32, #tpu.memory_space<vmem>>, vector<1x8x24xf32>,
    %7 = vector.extract_strided_slice %2 {offsets = [0, 24], sizes = [8, 24], strides = [1, 1]} : vector<16x96xf32> to vector<8x24xf32>
    %c1 = arith.constant 1 : index
    %c0_6 = arith.constant 0 : index
    %c0_7 = arith.constant 0 : index
    %8 = vector.load %arg13[%c1, %c0_6, %c0_7] : memref<8x8x24xf32, #tpu.memory_space<vmem>>, vector<1x8x24xf32>
    %9 = vector.shape_cast %8 : vector<1x8x24xf32> to vector<8x24xf32>
    %10 = vector.shape_cast %7 : vector<8x24xf32> to vector<1x8x24xf32>
    tpu.vector_store %arg13[%c1, %c0_6, %c0_7], %10 {strides = array<i32>} : memref<8x8x24xf32, #tpu.memory_space<vmem>>, vector<1x8x24xf32>,
    %11 = vector.extract_strided_slice %2 {offsets = [0, 48], sizes = [8, 24], strides = [1, 1]} : vector<16x96xf32> to vector<8x24xf32>
    %c2 = arith.constant 2 : index
    %c0_8 = arith.constant 0 : index
    %c0_9 = arith.constant 0 : index
    %12 = vector.load %arg13[%c2, %c0_8, %c0_9] : memref<8x8x24xf32, #tpu.memory_space<vmem>>, vector<1x8x24xf32>
    %13 = vector.shape_cast %12 : vector<1x8x24xf32> to vector<8x24xf32>
    %14 = vector.shape_cast %11 : vector<8x24xf32> to vector<1x8x24xf32>
    tpu.vector_store %arg13[%c2, %c0_8, %c0_9], %14 {strides = array<i32>} : memref<8x8x24xf32, #tpu.memory_space<vmem>>, vector<1x8x24xf32>,
    %15 = vector.extract_strided_slice %2 {offsets = [0, 72], sizes = [8, 24], strides = [1, 1]} : vector<16x96xf32> to vector<8x24xf32>
    %c3 = arith.constant 3 : index
    %c0_10 = arith.constant 0 : index
    %c0_11 = arith.constant 0 : index
    %16 = vector.load %arg13[%c3, %c0_10, %c0_11] : memref<8x8x24xf32, #tpu.memory_space<vmem>>, vector<1x8x24xf32>
    %17 = vector.shape_cast %16 : vector<1x8x24xf32> to vector<8x24xf32>
    %18 = vector.shape_cast %15 : vector<8x24xf32> to vector<1x8x24xf32>
    tpu.vector_store %arg13[%c3, %c0_10, %c0_11], %18 {strides = array<i32>} : memref<8x8x24xf32, #tpu.memory_space<vmem>>, vector<1x8x24xf32>,
    %19 = vector.extract_strided_slice %2 {offsets = [8, 0], sizes = [8, 24], strides = [1, 1]} : vector<16x96xf32> to vector<8x24xf32>
    %c4 = arith.constant 4 : index
    %c0_12 = arith.constant 0 : index
    %c0_13 = arith.constant 0 : index
    %20 = vector.load %arg13[%c4, %c0_12, %c0_13] : memref<8x8x24xf32, #tpu.memory_space<vmem>>, vector<1x8x24xf32>
    %21 = vector.shape_cast %20 : vector<1x8x24xf32> to vector<8x24xf32>
    %22 = vector.shape_cast %19 : vector<8x24xf32> to vector<1x8x24xf32>
    tpu.vector_store %arg13[%c4, %c0_12, %c0_13], %22 {strides = array<i32>} : memref<8x8x24xf32, #tpu.memory_space<vmem>>, vector<1x8x24xf32>,
    %23 = vector.extract_strided_slice %2 {offsets = [8, 24], sizes = [8, 24], strides = [1, 1]} : vector<16x96xf32> to vector<8x24xf32>
    %c5 = arith.constant 5 : index
    %c0_14 = arith.constant 0 : index
    %c0_15 = arith.constant 0 : index
    %24 = vector.load %arg13[%c5, %c0_14, %c0_15] : memref<8x8x24xf32, #tpu.memory_space<vmem>>, vector<1x8x24xf32>
    %25 = vector.shape_cast %24 : vector<1x8x24xf32> to vector<8x24xf32>
    %26 = vector.shape_cast %23 : vector<8x24xf32> to vector<1x8x24xf32>
    tpu.vector_store %arg13[%c5, %c0_14, %c0_15], %26 {strides = array<i32>} : memref<8x8x24xf32, #tpu.memory_space<vmem>>, vector<1x8x24xf32>,
    %27 = vector.extract_strided_slice %2 {offsets = [8, 48], sizes = [8, 24], strides = [1, 1]} : vector<16x96xf32> to vector<8x24xf32>
    %c6 = arith.constant 6 : index
    %c0_16 = arith.constant 0 : index
    %c0_17 = arith.constant 0 : index
    %28 = vector.load %arg13[%c6, %c0_16, %c0_17] : memref<8x8x24xf32, #tpu.memory_space<vmem>>, vector<1x8x24xf32>
    %29 = vector.shape_cast %28 : vector<1x8x24xf32> to vector<8x24xf32>
    %30 = vector.shape_cast %27 : vector<8x24xf32> to vector<1x8x24xf32>
    tpu.vector_store %arg13[%c6, %c0_16, %c0_17], %30 {strides = array<i32>} : memref<8x8x24xf32, #tpu.memory_space<vmem>>, vector<1x8x24xf32>,
    %31 = vector.extract_strided_slice %2 {offsets = [8, 72], sizes = [8, 24], strides = [1, 1]} : vector<16x96xf32> to vector<8x24xf32>
    %c7 = arith.constant 7 : index
    %c0_18 = arith.constant 0 : index
    %c0_19 = arith.constant 0 : index
    %32 = vector.load %arg13[%c7, %c0_18, %c0_19] : memref<8x8x24xf32, #tpu.memory_space<vmem>>, vector<1x8x24xf32>
    %33 = vector.shape_cast %32 : vector<1x8x24xf32> to vector<8x24xf32>
    %34 = vector.shape_cast %31 : vector<8x24xf32> to vector<1x8x24xf32>
    tpu.vector_store %arg13[%c7, %c0_18, %c0_19], %34 {strides = array<i32>} : memref<8x8x24xf32, #tpu.memory_space<vmem>>, vector<1x8x24xf32>,
    %c0_20 = arith.constant 0 : index
    %c0_21 = arith.constant 0 : index
    %c0_22 = arith.constant 0 : index
    %35 = vector.load %arg13[%c0_20, %c0_21, %c0_22] : memref<8x8x24xf32, #tpu.memory_space<vmem>>, vector<8x8x24xf32>
    %36 = vector.extract_strided_slice %35 {offsets = [0, 0, 0], sizes = [8, 8, 8], strides = [1, 1, 1]} : vector<8x8x24xf32> to vector<8x8x8xf32>
    %37 = vector.extract_strided_slice %35 {offsets = [0, 0, 8], sizes = [8, 8, 8], strides = [1, 1, 1]} : vector<8x8x24xf32> to vector<8x8x8xf32>
    %38 = vector.extract_strided_slice %35 {offsets = [0, 0, 16], sizes = [8, 8, 8], strides = [1, 1, 1]} : vector<8x8x24xf32> to vector<8x8x8xf32>
    "tpu.trace_start"() <{level = 10 : i32, message = "gtd,gsd->gts"}> : () -> ()
    %cst_23 = arith.constant dense<0.000000e+00> : vector<8x8x8xf32>
    %39 = tpu.matmul %36, %37, %cst_23 {dimension_numbers = #tpu.dot_dimension_numbers<[2], [2], [1], [1], [0, 0, 0, 1, 1, 1], [0], [0]>} : vector<8x8x8xf32>, vector<8x8x8xf32>, vector<8x8x8xf32> -> vector<8x8x8xf32>
    "tpu.trace_stop"() : () -> ()
    %cst_24 = arith.constant 0.353553385 : f32
    %40 = vector.broadcast %cst_24 : f32 to vector<8x8x8xf32>
    %41 = arith.mulf %39, %40 : vector<8x8x8xf32>
    %42 = tpu.iota {dimensions = array<i32: 0>} : vector<8x8xi32>
    %43 = tpu.iota {dimensions = array<i32: 1>} : vector<8x8xi32>
    %44 = arith.cmpi sle, %43, %42 : vector<8x8xi32>
    %45 = vector.shape_cast %44 : vector<8x8xi1> to vector<1x8x8xi1>
    %cst_25 = arith.constant -1.000000e+30 : f32
    %46 = vector.shape_cast %45 : vector<1x8x8xi1> to vector<1x8x8xi1>
    %47 = vector.broadcast %46 : vector<1x8x8xi1> to vector<8x8x8xi1>
    %48 = vector.broadcast %cst_25 : f32 to vector<8x8x8xf32>
    %49 = arith.select %47, %41, %48 : vector<8x8x8xi1>, vector<8x8x8xf32>
    %cst_26 = arith.constant dense<0xFF800000> : vector<8x8xf32>
    %50 = vector.multi_reduction <maximumf>, %49, %cst_26 [2] : vector<8x8x8xf32> to vector<8x8xf32>
    %51 = vector.shape_cast %50 : vector<8x8xf32> to vector<8x8x1xf32>
    %52 = vector.broadcast %51 : vector<8x8x1xf32> to vector<8x8x8xf32>
    %53 = arith.subf %49, %52 : vector<8x8x8xf32>
    %54 = math.exp %53 : vector<8x8x8xf32>
    %cst_27 = arith.constant dense<0.000000e+00> : vector<8x8xf32>
    %55 = vector.multi_reduction <add>, %54, %cst_27 [2] : vector<8x8x8xf32> to vector<8x8xf32>
    %56 = vector.shape_cast %55 : vector<8x8xf32> to vector<8x8x1xf32>
    %57 = vector.broadcast %56 : vector<8x8x1xf32> to vector<8x8x8xf32>
    %58 = arith.divf %54, %57 : vector<8x8x8xf32>
    "tpu.trace_start"() <{level = 10 : i32, message = "gts,gsd->gtd"}> : () -> ()
    %cst_28 = arith.constant dense<0.000000e+00> : vector<8x8x8xf32>
    %59 = tpu.matmul %58, %38, %cst_28 {dimension_numbers = #tpu.dot_dimension_numbers<[2], [1], [1], [2], [0, 0, 0, 1, 1, 2], [0], [0]>} : vector<8x8x8xf32>, vector<8x8x8xf32>, vector<8x8x8xf32> -> vector<8x8x8xf32>
    "tpu.trace_stop"() : () -> ()
    %c0_29 = arith.constant 0 : index
    %c0_30 = arith.constant 0 : index
    %c0_31 = arith.constant 0 : index
    %60 = vector.load %arg2[%c0_29, %c0_30, %c0_31] : memref<8x8x32xf32, #tpu.memory_space<vmem>>, vector<8x8x32xf32>
    "tpu.trace_start"() <{level = 10 : i32, message = "gtd,gdc->gtc"}> : () -> ()
    %cst_32 = arith.constant dense<0.000000e+00> : vector<8x8x32xf32>
    %61 = tpu.matmul %59, %60, %cst_32 {dimension_numbers = #tpu.dot_dimension_numbers<[2], [1], [1], [2], [0, 0, 0, 1, 1, 2], [0], [0]>} : vector<8x8x8xf32>, vector<8x8x32xf32>, vector<8x8x32xf32> -> vector<8x8x32xf32>
    "tpu.trace_stop"() : () -> ()
    %62 = vector.extract_strided_slice %61 {offsets = [0, 0, 0], sizes = [1, 8, 32], strides = [1, 1, 1]} : vector<8x8x32xf32> to vector<1x8x32xf32>
    %63 = vector.shape_cast %62 : vector<1x8x32xf32> to vector<8x32xf32>
    %64 = vector.extract_strided_slice %61 {offsets = [1, 0, 0], sizes = [1, 8, 32], strides = [1, 1, 1]} : vector<8x8x32xf32> to vector<1x8x32xf32>
    %65 = vector.shape_cast %64 : vector<1x8x32xf32> to vector<8x32xf32>
    %66 = arith.addf %63, %65 : vector<8x32xf32>
    %67 = vector.extract_strided_slice %61 {offsets = [2, 0, 0], sizes = [1, 8, 32], strides = [1, 1, 1]} : vector<8x8x32xf32> to vector<1x8x32xf32>
    %68 = vector.shape_cast %67 : vector<1x8x32xf32> to vector<8x32xf32>
    %69 = arith.addf %66, %68 : vector<8x32xf32>
    %70 = vector.extract_strided_slice %61 {offsets = [3, 0, 0], sizes = [1, 8, 32], strides = [1, 1, 1]} : vector<8x8x32xf32> to vector<1x8x32xf32>
    %71 = vector.shape_cast %70 : vector<1x8x32xf32> to vector<8x32xf32>
    %72 = arith.addf %69, %71 : vector<8x32xf32>
    %c0_33 = arith.constant 0 : index
    %c0_34 = arith.constant 0 : index
    %73 = vector.load %arg14[%c0_33, %c0_34] : memref<16x32xf32, #tpu.memory_space<vmem>>, vector<8x32xf32>
    tpu.vector_store %arg14[%c0_33, %c0_34], %72 {strides = array<i32>} : memref<16x32xf32, #tpu.memory_space<vmem>>, vector<8x32xf32>,
    %74 = vector.extract_strided_slice %61 {offsets = [4, 0, 0], sizes = [1, 8, 32], strides = [1, 1, 1]} : vector<8x8x32xf32> to vector<1x8x32xf32>
    %75 = vector.shape_cast %74 : vector<1x8x32xf32> to vector<8x32xf32>
    %76 = vector.extract_strided_slice %61 {offsets = [5, 0, 0], sizes = [1, 8, 32], strides = [1, 1, 1]} : vector<8x8x32xf32> to vector<1x8x32xf32>
    %77 = vector.shape_cast %76 : vector<1x8x32xf32> to vector<8x32xf32>
    %78 = arith.addf %75, %77 : vector<8x32xf32>
    %79 = vector.extract_strided_slice %61 {offsets = [6, 0, 0], sizes = [1, 8, 32], strides = [1, 1, 1]} : vector<8x8x32xf32> to vector<1x8x32xf32>
    %80 = vector.shape_cast %79 : vector<1x8x32xf32> to vector<8x32xf32>
    %81 = arith.addf %78, %80 : vector<8x32xf32>
    %82 = vector.extract_strided_slice %61 {offsets = [7, 0, 0], sizes = [1, 8, 32], strides = [1, 1, 1]} : vector<8x8x32xf32> to vector<1x8x32xf32>
    %83 = vector.shape_cast %82 : vector<1x8x32xf32> to vector<8x32xf32>
    %84 = arith.addf %81, %83 : vector<8x32xf32>
    %c8 = arith.constant 8 : index
    %c0_35 = arith.constant 0 : index
    %85 = vector.load %arg14[%c8, %c0_35] : memref<16x32xf32, #tpu.memory_space<vmem>>, vector<8x32xf32>
    tpu.vector_store %arg14[%c8, %c0_35], %84 {strides = array<i32>} : memref<16x32xf32, #tpu.memory_space<vmem>>, vector<8x32xf32>,
    %c0_36 = arith.constant 0 : index
    %c0_37 = arith.constant 0 : index
    %86 = vector.load %arg14[%c0_36, %c0_37] : memref<16x32xf32, #tpu.memory_space<vmem>>, vector<16x32xf32>
    %c0_38 = arith.constant 0 : index
    %c0_39 = arith.constant 0 : index
    %87 = vector.load %arg3[%c0_38, %c0_39] : memref<1x32xf32, #tpu.memory_space<vmem>>, vector<1x32xf32>
    %88 = vector.shape_cast %87 : vector<1x32xf32> to vector<32xf32>
    %89 = vector.shape_cast %88 : vector<32xf32> to vector<1x32xf32>
    %90 = vector.broadcast %89 : vector<1x32xf32> to vector<16x32xf32>
    %91 = arith.addf %86, %90 : vector<16x32xf32>
    %92 = arith.addf %0, %91 : vector<16x32xf32>
    %c0_40 = arith.constant 0 : index
    %c0_41 = arith.constant 0 : index
    %93 = vector.load %arg4[%c0_40, %c0_41] : memref<1x32xf32, #tpu.memory_space<vmem>>, vector<1x32xf32>
    %94 = vector.shape_cast %93 : vector<1x32xf32> to vector<32xf32>
    %c0_42 = arith.constant 0 : index
    %c0_43 = arith.constant 0 : index
    %95 = vector.load %arg5[%c0_42, %c0_43] : memref<1x32xf32, #tpu.memory_space<vmem>>, vector<1x32xf32>
    %96 = vector.shape_cast %95 : vector<1x32xf32> to vector<32xf32>
    %cst_44 = arith.constant dense<0.000000e+00> : vector<16xf32>
    %97 = vector.multi_reduction <add>, %92, %cst_44 [1] : vector<16x32xf32> to vector<16xf32>
    %98 = vector.shape_cast %97 : vector<16xf32> to vector<16x1xf32>
    %cst_45 = arith.constant 3.200000e+01 : f32
    %99 = vector.broadcast %cst_45 : f32 to vector<16x1xf32>
    %100 = arith.divf %98, %99 : vector<16x1xf32>
    %101 = vector.broadcast %100 : vector<16x1xf32> to vector<16x32xf32>
    %102 = arith.subf %92, %101 : vector<16x32xf32>
    %103 = arith.mulf %102, %102 : vector<16x32xf32>
    %cst_46 = arith.constant dense<0.000000e+00> : vector<16xf32>
    %104 = vector.multi_reduction <add>, %103, %cst_46 [1] : vector<16x32xf32> to vector<16xf32>
    %105 = vector.shape_cast %104 : vector<16xf32> to vector<16x1xf32>
    %cst_47 = arith.constant 3.200000e+01 : f32
    %106 = vector.broadcast %cst_47 : f32 to vector<16x1xf32>
    %107 = arith.divf %105, %106 : vector<16x1xf32>
    %108 = vector.broadcast %100 : vector<16x1xf32> to vector<16x32xf32>
    %109 = arith.subf %92, %108 : vector<16x32xf32>
    %cst_48 = arith.constant 9.99999974E-6 : f32
    %110 = vector.broadcast %cst_48 : f32 to vector<16x1xf32>
    %111 = arith.addf %107, %110 : vector<16x1xf32>
    %112 = math.rsqrt %111 : vector<16x1xf32>
    %113 = vector.broadcast %112 : vector<16x1xf32> to vector<16x32xf32>
    %114 = arith.mulf %109, %113 : vector<16x32xf32>
    %115 = vector.shape_cast %94 : vector<32xf32> to vector<1x32xf32>
    %116 = vector.broadcast %115 : vector<1x32xf32> to vector<16x32xf32>
    %117 = arith.mulf %114, %116 : vector<16x32xf32>
    %118 = vector.shape_cast %96 : vector<32xf32> to vector<1x32xf32>
    %119 = vector.broadcast %118 : vector<1x32xf32> to vector<16x32xf32>
    %120 = arith.addf %117, %119 : vector<16x32xf32>
    %c0_49 = arith.constant 0 : index
    %c0_50 = arith.constant 0 : index
    %121 = vector.load %arg6[%c0_49, %c0_50] : memref<32x128xf32, #tpu.memory_space<vmem>>, vector<32x128xf32>
    %cst_51 = arith.constant dense<0.000000e+00> : vector<16x128xf32>
    %122 = tpu.matmul %120, %121, %cst_51 {dimension_numbers = #tpu.dot_dimension_numbers<[1], [0], [0], [1], [0, 0, 1, 1], [], []>} : vector<16x32xf32>, vector<32x128xf32>, vector<16x128xf32> -> vector<16x128xf32>
    %c0_52 = arith.constant 0 : index
    %c0_53 = arith.constant 0 : index
    %123 = vector.load %arg7[%c0_52, %c0_53] : memref<1x128xf32, #tpu.memory_space<vmem>>, vector<1x128xf32>
    %124 = vector.shape_cast %123 : vector<1x128xf32> to vector<128xf32>
    %125 = vector.shape_cast %124 : vector<128xf32> to vector<1x128xf32>
    %126 = vector.broadcast %125 : vector<1x128xf32> to vector<16x128xf32>
    %127 = arith.addf %122, %126 : vector<16x128xf32>
    %cst_54 = arith.constant 0.000000e+00 : f32
    %128 = vector.broadcast %cst_54 : f32 to vector<16x128xf32>
    %129 = arith.maximumf %127, %128 : vector<16x128xf32>
    %c0_55 = arith.constant 0 : index
    %c0_56 = arith.constant 0 : index
    %130 = vector.load %arg8[%c0_55, %c0_56] : memref<128x32xf32, #tpu.memory_space<vmem>>, vector<128x32xf32>
    %cst_57 = arith.constant dense<0.000000e+00> : vector<16x32xf32>
    %131 = tpu.matmul %129, %130, %cst_57 {dimension_numbers = #tpu.dot_dimension_numbers<[1], [0], [0], [1], [0, 0, 1, 1], [], []>} : vector<16x128xf32>, vector<128x32xf32>, vector<16x32xf32> -> vector<16x32xf32>
    %c0_58 = arith.constant 0 : index
    %c0_59 = arith.constant 0 : index
    %132 = vector.load %arg9[%c0_58, %c0_59] : memref<1x32xf32, #tpu.memory_space<vmem>>, vector<1x32xf32>
    %133 = vector.shape_cast %132 : vector<1x32xf32> to vector<32xf32>
    %134 = vector.shape_cast %133 : vector<32xf32> to vector<1x32xf32>
    %135 = vector.broadcast %134 : vector<1x32xf32> to vector<16x32xf32>
    %136 = arith.addf %131, %135 : vector<16x32xf32>
    %137 = arith.addf %120, %136 : vector<16x32xf32>
    %c0_60 = arith.constant 0 : index
    %c0_61 = arith.constant 0 : index
    %138 = vector.load %arg10[%c0_60, %c0_61] : memref<1x32xf32, #tpu.memory_space<vmem>>, vector<1x32xf32>
    %139 = vector.shape_cast %138 : vector<1x32xf32> to vector<32xf32>
    %c0_62 = arith.constant 0 : index
    %c0_63 = arith.constant 0 : index
    %140 = vector.load %arg11[%c0_62, %c0_63] : memref<1x32xf32, #tpu.memory_space<vmem>>, vector<1x32xf32>
    %141 = vector.shape_cast %140 : vector<1x32xf32> to vector<32xf32>
    %cst_64 = arith.constant dense<0.000000e+00> : vector<16xf32>
    %142 = vector.multi_reduction <add>, %137, %cst_64 [1] : vector<16x32xf32> to vector<16xf32>
    %143 = vector.shape_cast %142 : vector<16xf32> to vector<16x1xf32>
    %cst_65 = arith.constant 3.200000e+01 : f32
    %144 = vector.broadcast %cst_65 : f32 to vector<16x1xf32>
    %145 = arith.divf %143, %144 : vector<16x1xf32>
    %146 = vector.broadcast %145 : vector<16x1xf32> to vector<16x32xf32>
    %147 = arith.subf %137, %146 : vector<16x32xf32>
    %148 = arith.mulf %147, %147 : vector<16x32xf32>
    %cst_66 = arith.constant dense<0.000000e+00> : vector<16xf32>
    %149 = vector.multi_reduction <add>, %148, %cst_66 [1] : vector<16x32xf32> to vector<16xf32>
    %150 = vector.shape_cast %149 : vector<16xf32> to vector<16x1xf32>
    %cst_67 = arith.constant 3.200000e+01 : f32
    %151 = vector.broadcast %cst_67 : f32 to vector<16x1xf32>
    %152 = arith.divf %150, %151 : vector<16x1xf32>
    %153 = vector.broadcast %145 : vector<16x1xf32> to vector<16x32xf32>
    %154 = arith.subf %137, %153 : vector<16x32xf32>
    %cst_68 = arith.constant 9.99999974E-6 : f32
    %155 = vector.broadcast %cst_68 : f32 to vector<16x1xf32>
    %156 = arith.addf %152, %155 : vector<16x1xf32>
    %157 = math.rsqrt %156 : vector<16x1xf32>
    %158 = vector.broadcast %157 : vector<16x1xf32> to vector<16x32xf32>
    %159 = arith.mulf %154, %158 : vector<16x32xf32>
    %160 = vector.shape_cast %139 : vector<32xf32> to vector<1x32xf32>
    %161 = vector.broadcast %160 : vector<1x32xf32> to vector<16x32xf32>
    %162 = arith.mulf %159, %161 : vector<16x32xf32>
    %163 = vector.shape_cast %141 : vector<32xf32> to vector<1x32xf32>
    %164 = vector.broadcast %163 : vector<1x32xf32> to vector<16x32xf32>
    %165 = arith.addf %162, %164 : vector<16x32xf32>
    %c0_69 = arith.constant 0 : index
    %c0_70 = arith.constant 0 : index
    %166 = vector.load %arg12[%c0_69, %c0_70] : memref<16x32xf32, #tpu.memory_space<vmem>>, vector<16x32xf32>
    tpu.vector_store %arg12[%c0_69, %c0_70], %165 {strides = array<i32>} : memref<16x32xf32, #tpu.memory_space<vmem>>, vector<16x32xf32>,
    return
  }
}

</mosaic_0001>

<bundles_post_ra>
// kernel: tpu_custom_call.1
= control target key start
LH: loop header
LB: loop body
LE: loop exit
PB: predicated region body
PF: predicated region fallthrough
CT: control target
= control target key end

     0   :  { %vm48_vm0 = vcmask 261120   ;;  %s3253_s0 = inlined_call_operand.vmem [shape: f32[16,32], index: 0, kind: input, shape index: {}]   ;;  %s3254_s1 = inlined_call_operand.vmem [shape: f32[32,96], index: 1, kind: input, shape index: {}]   ;;  %s3255_s2 = inlined_call_operand.vmem [shape: f32[8,8,32], index: 2, kind: input, shape index: {}]   ;;  %s3256_s3 = inlined_call_operand.vmem [shape: f32[1,32], index: 3, kind: input, shape index: {}]   ;;  %s3257_s4 = inlined_call_operand.vmem [shape: f32[1,32], index: 4, kind: input, shape index: {}]   ;;  %s3258_s5 = inlined_call_operand.vmem [shape: f32[1,32], index: 5, kind: input, shape index: {}]   ;;  %s3259_s6 = inlined_call_operand.vmem [shape: f32[32,128], index: 6, kind: input, shape index: {}]   ;;  %s3260_s7 = inlined_call_operand.vmem [shape: f32[1,128], index: 7, kind: input, shape index: {}]   ;;  %s3261_s8 = inlined_call_operand.vmem [shape: f32[128,32], index: 8, kind: input, shape index: {}]   ;;  %s3262_s9 = inlined_call_operand.vmem [shape: f32[1,32], index: 9, kind: input, shape index: {}]   ;;  %s3263_s10 = inlined_call_operand.vmem [shape: f32[1,32], index: 10, kind: input, shape index: {}]   ;;  %s3264_s11 = inlined_call_operand.vmem [shape: f32[1,32], index: 11, kind: input, shape index: {}]   ;;  %s3265_s12 = inlined_call_operand.hbm [shape: f32[16,32], index: 12, kind: output, shape index: {}]  }
   0x1   :  { %v47_v0 = vld [vmem:[%s3254_s1 + $0x18] sm:$0xff]  ;;  %v46_v1 = vld [vmem:[%s3254_s1 + $0x10] sm:$0xff]  ;;  %v2878_v2 = vld [vmem:[%s3253_s0] sm:$0xff] }
   0x2   :  { %2545 = vmatprep.subr.mxu0 %v47_v0  ;;  %v45_v3 = vld [vmem:[%s3254_s1 + $0x8] sm:$0xff]  ;;  %2553 = vmatprep.mubr.msk.f32.mxu0 %vm48_vm0, %v2878_v2 }
   0x3   :  { %2546 = vmatpush3.msra.mxu0 %v47_v0 }
   0x4   :  { %17 = vsyncpa [#allocation5], 0  ;;  %2547 = vmatprep.subr.mxu0 %v46_v1  ;;  %v44_v4 = vld [vmem:[%s3254_s1] sm:$0xff]  ;;  %v2891_v5 = vld [vmem:[%s3253_s0 + $0x8] sm:$0xff]  ;;  %vm130_vm1 = vcmask 195584   ;;  %v2794_v6 = vmov 0.0   ;;  %v799_v31 = vlaneseq }
   0x5   :  { %2548 = vmatpush3.msra.mxu0 %v46_v1  ;;  %2581 = vmatprep.subr.mxu1 %v2794_v6  ;;  %s2795_s1 = smov 56   ;;  %s2796_s0 = smov 104   ;;  %vm2797_vm2 = vmmov 0   ;;  %vm177_vm3 = vcmask 64512  }
   0x6   :  { %2549 = vmatprep.subr.mxu0 %v45_v3  ;;  %2583 = vmatprep.mubr.msk.f32.mxu1 %vm2797_vm2, %v2794_v6  ;;  %s2798_s15 = smov 80   ;;  %s2799_s16 = smov 120   ;;  %v800_v32 = vshrl.u32 %v799_v31, 7  ;;  %v802_v33 = vand.u32 127, %v799_v31 }
   0x7   :  { %2550 = vmatpush3.msra.mxu0 %v45_v3  ;;  %s2800_s17 = smov 112  }
   0x8   :  { %2551 = vmatprep.subr.mxu0 %v44_v4  ;;  %vm2989_vm4 = vcmp.le.s32.totalorder %v802_v33, %v800_v32 }
   0x9   :  { %2552 = vmatpush3.msra.mxu0 %v44_v4 }
   0xa   :  { %2554 = vmatmul.mubr.msk.f32.vlgmr.msra.gmra.mxu0 %vm48_vm0, %v2891_v5  ;;  %2556 = vmatprep.subr.mxu0 %v2794_v6 }
   0xb   :  { %2558 = vmatprep.mubr.msk.f32.mxu0 %vm2797_vm2, %v2794_v6 }
  0xca   :  { %v2555_v7 = vpop.f32.mrf.mxu0 }
  0xcb   :  { %149 = vst.msk [vmem:[#allocation2 + $0x20] sm:$0xff] %vm130_vm1, %v2555_v7 }
  0xcc   :  { %v121_v8 = vpop.f32.mrf.mxu0 }
  0xcd   :  { %131 = vst.msk [vmem:[#allocation2] sm:$0xff] %vm130_vm1, %v121_v8  ;;  %143 = vrot.lane.b32.xlu1 %v121_v8, %s2795_s1  ;;  %133 = vrot.lane.b32.xlu0 %v121_v8, %s2796_s0 }
  0xd1   :  { %151 = vrot.lane.b32.xlu1 %v2555_v7, %s2796_s0  ;;  %138 = vrot.lane.b32.xlu0 %v121_v8, %s2798_s15 }
  0xd2   :  { %v2933_v21 = vld [vmem:[#allocation2 + $0x20] sm:$0xff] }
  0xd4   :  { %v2903_v9 = vld [vmem:[#allocation2] sm:$0xff] }
  0xd5   :  { %161 = vrot.lane.b32.xlu1 %v2555_v7, %s2795_s1  ;;  %156 = vrot.lane.b32.xlu0 %v2555_v7, %s2798_s15  ;;  %s2801_s15 = smov [#allocation4]  }
  0xd9   :  { %175 = vrot.lane.b32.xlu0 %v2903_v9, %s2799_s16 }
 0x13f   :  { %v144_v10 = vpop.permute.xlu1 %143  ;;  %v134_v11 = vpop.permute.xlu0 %133 }
 0x140   :  { %147 = vst.msk [vmem:[#allocation2 + $0x18] sm:$0xff] %vm130_vm1, %v144_v10  ;;  %137 = vst.msk [vmem:[#allocation2 + $0x8] sm:$0xff] %vm130_vm1, %v134_v11 }
 0x143   :  { %v152_v12 = vpop.permute.xlu1 %151  ;;  %v139_v13 = vpop.permute.xlu0 %138 }
 0x144   :  { %155 = vst.msk [vmem:[#allocation2 + $0x28] sm:$0xff] %vm130_vm1, %v152_v12  ;;  %142 = vst.msk [vmem:[#allocation2 + $0x10] sm:$0xff] %vm130_vm1, %v139_v13 }
 0x147   :  { %v162_v14 = vpop.permute.xlu1 %161  ;;  %v157_v15 = vpop.permute.xlu0 %156  ;;  %v2911_v16 = vld [vmem:[#allocation2 + $0x8] sm:$0xff]  ;;  %v2917_v18 = vld [vmem:[#allocation2 + $0x18] sm:$0xff] }
 0x148   :  { %165 = vst.msk [vmem:[#allocation2 + $0x38] sm:$0xff] %vm130_vm1, %v162_v14  ;;  %160 = vst.msk [vmem:[#allocation2 + $0x30] sm:$0xff] %vm130_vm1, %v157_v15  ;;  %253 = vrot.lane.b32.xlu1 %v2911_v16, %s2799_s16 }
 0x14b   :  { %v176_v17 = vpop.permute.xlu0 %175  ;;  %v2919_v19 = vld [vmem:[#allocation2 + $0x10] sm:$0xff]  ;;  %v2927_v20 = vld [vmem:[#allocation2 + $0x28] sm:$0xff] }
 0x14c   :  { %407 = vrot.lane.b32.xlu1 %v2917_v18, %s2799_s16  ;;  %330 = vrot.lane.b32.xlu0 %v2919_v19, %s2799_s16 }
 0x14d   :  { %2557 = vmatpush3.xpose.msk.msra.mxu0 %vm177_vm3, %v176_v17 }
 0x14e   :  { %2561 = vmatprep.subr.mxu0 %v2794_v6 }
 0x14f   :  { %v2939_v22 = vld [vmem:[#allocation2 + $0x38] sm:$0xff]  ;;  %v2943_v23 = vld [vmem:[#allocation2 + $0x30] sm:$0xff] }
 0x150   :  { %2559 = vmatmul.mubr.msk.f32.vlgmr.msra.gmra.mxu0 %vm177_vm3, %v2903_v9  ;;  %561 = vrot.lane.b32.xlu1 %v2927_v20, %s2799_s16 }
 0x151   :  { %484 = vrot.lane.b32.xlu0 %v2933_v21, %s2799_s16  ;;  %2563 = vmatprep.mubr.msk.f32.mxu0 %vm2797_vm2, %v2794_v6 }
 0x154   :  { %715 = vrot.lane.b32.xlu1 %v2939_v22, %s2799_s16 }
 0x155   :  { %638 = vrot.lane.b32.xlu0 %v2943_v23, %s2799_s16  ;;  %s2413_s16 = sshll.u32 %s2801_s15, 4  ;;  %s2414_s16 = int_to_ptr.vmem [resolvable:$true] %s2413_s16 }
 0x156   :  { %p2777_p1 = scmp.lt.s32.totalorder %s2414_s16, %s2414_s16 }
 0x1ba   :  { %v254_v24 = vpop.permute.xlu1 %253 }
 0x1bb   :  { %2562 = vmatpush3.xpose.msk.msra.mxu0 %vm177_vm3, %v254_v24 }
 0x1bc   :  { %2566 = vmatprep.subr.mxu0 %v2794_v6 }
 0x1be   :  { %v408_v25 = vpop.permute.xlu1 %407  ;;  %2564 = vmatmul.mubr.msk.f32.vlgmr.msra.gmra.mxu0 %vm177_vm3, %v2911_v16  ;;  %v331_v26 = vpop.permute.xlu0 %330 }
 0x1bf   :  { %2567 = vmatpush3.xpose.msk.msra.mxu0 %vm177_vm3, %v331_v26  ;;  %2568 = vmatprep.mubr.msk.f32.mxu0 %vm2797_vm2, %v2794_v6 }
 0x1c0   :  { %2571 = vmatprep.subr.mxu0 %v2794_v6 }
 0x1c2   :  { %v562_v27 = vpop.permute.xlu1 %561  ;;  %2569 = vmatmul.mubr.msk.f32.vlgmr.msra.gmra.mxu0 %vm177_vm3, %v2919_v19 }
 0x1c3   :  { %2572 = vmatpush3.xpose.msk.msra.mxu0 %vm177_vm3, %v408_v25  ;;  %2582 = vmatpush3.xpose.msk.msra.mxu1 %vm177_vm3, %v562_v27  ;;  %v485_v28 = vpop.permute.xlu0 %484 }
 0x1c4   :  { %2573 = vmatprep.mubr.msk.f32.mxu0 %vm2797_vm2, %v2794_v6  ;;  %2591 = vmatprep.subr.mxu1 %v2794_v6 }
 0x1c5   :  { %2576 = vmatprep.subr.mxu0 %v2794_v6 }
 0x1c6   :  { %2584 = vmatmul.mubr.msk.f32.vlgmr.msra.gmra.mxu1 %vm177_vm3, %v2927_v20  ;;  %v716_v29 = vpop.permute.xlu1 %715  ;;  %2574 = vmatmul.mubr.msk.f32.vlgmr.msra.gmra.mxu0 %vm177_vm3, %v2917_v18 }
 0x1c7   :  { %2577 = vmatpush3.xpose.msk.msra.mxu0 %vm177_vm3, %v485_v28  ;;  %2592 = vmatpush3.xpose.msk.msra.mxu1 %vm177_vm3, %v716_v29  ;;  %v639_v30 = vpop.permute.xlu0 %638 }
 0x1c8   :  { %2578 = vmatprep.mubr.msk.f32.mxu0 %vm2797_vm2, %v2794_v6  ;;  %2593 = vmatprep.mubr.msk.f32.mxu1 %vm2797_vm2, %v2794_v6 }
 0x1c9   :  { %2586 = vmatprep.subr.mxu0 %v2794_v6  ;;  %2601 = vmatprep.subr.mxu1 %v2794_v6 }
 0x1ca   :  { %2579 = vmatmul.mubr.msk.f32.vlgmr.msra.gmra.mxu0 %vm177_vm3, %v2933_v21  ;;  %2594 = vmatmul.mubr.msk.f32.vlgmr.msra.gmra.mxu1 %vm177_vm3, %v2939_v22 }
 0x1cb   :  { %2587 = vmatpush3.xpose.msk.msra.mxu0 %vm177_vm3, %v639_v30  ;;  %2588 = vmatprep.mubr.msk.f32.mxu0 %vm2797_vm2, %v2794_v6 }
 0x1cc   :  { %2596 = vmatprep.subr.mxu0 %v2794_v6  ;;  %2603 = vmatprep.mubr.msk.f32.mxu1 %vm2797_vm2, %v2794_v6 }
 0x1ce   :  { %2589 = vmatmul.mubr.msk.f32.vlgmr.msra.gmra.mxu0 %vm177_vm3, %v2943_v23 }
 0x1cf   :  { %2598 = vmatprep.mubr.msk.f32.mxu0 %vm2797_vm2, %v2794_v6 }
 0x210   :  { %v248_v34 = vpop.f32.mrf.mxu0 }
 0x211   :  { %v791_v36 = vmul.f32 0.35355338, %v248_v34 }
 0x212   :  { %v2560_v37 = vpop.f32.mrf.mxu0 }
 0x213   :  { %v806_v38 = vsel %vm2989_vm4, %v791_v36, -1e+30 }
 0x214   :  { %v814_v39 = vsel %vm177_vm3, %v806_v38, -inf }
 0x215   :  { %815 = vmax.xlane.f32.xlu0 %v814_v39 }
 0x27e   :  { %v325_v40 = vpop.f32.mrf.mxu0 }
 0x27f   :  { %v792_v41 = vmul.f32 0.35355338, %v325_v40 }
 0x280   :  { %v2565_v42 = vpop.f32.mrf.mxu0 }
 0x281   :  { %v2998_v43 = vsel %vm2989_vm4, %v792_v41, -1e+30 }
 0x282   :  { %v402_v44 = vpop.f32.mrf.mxu0  ;;  %v817_v45 = vsel %vm177_vm3, %v2998_v43, -inf }
 0x283   :  { %v793_v46 = vmul.f32 0.35355338, %v402_v44  ;;  %818 = vmax.xlane.f32.xlu1 %v817_v45 }
 0x284   :  { %v2570_v47 = vpop.f32.mrf.mxu0 }
 0x285   :  { %v808_v48 = vsel %vm2989_vm4, %v793_v46, -1e+30 }
 0x286   :  { %v479_v49 = vpop.f32.mrf.mxu0  ;;  %v633_v50 = vpop.f32.mrf.mxu1  ;;  %v820_v51 = vsel %vm177_vm3, %v808_v48, -inf }
 0x287   :  { %v794_v52 = vmul.f32 0.35355338, %v479_v49  ;;  %v796_v53 = vmul.f32 0.35355338, %v633_v50  ;;  %821 = vmax.xlane.f32.xlu0 %v820_v51 }
 0x288   :  { %v2575_v54 = vpop.f32.mrf.mxu0  ;;  %v2585_v55 = vpop.f32.mrf.mxu1 }
 0x289   :  { %v809_v56 = vsel %vm2989_vm4, %v794_v52, -1e+30  ;;  %v811_v61 = vsel %vm2989_vm4, %v796_v53, -1e+30 }
 0x28a   :  { %v556_v57 = vpop.f32.mrf.mxu0  ;;  %v787_v58 = vpop.f32.mrf.mxu1  ;;  %v823_v59 = vsel %vm177_vm3, %v809_v56, -inf  ;;  %v829_v1 = vsel %vm177_vm3, %v811_v61, -inf }
 0x28b   :  { %v798_v60 = vmul.f32 0.35355338, %v787_v58  ;;  %824 = vmax.xlane.f32.xlu0 %v823_v59  ;;  %v795_v8 = vmul.f32 0.35355338, %v556_v57 }
 0x28c   :  { %v2580_v62 = vpop.f32.mrf.mxu0  ;;  %v2595_v63 = vpop.f32.mrf.mxu1 }
 0x28d   :  { %v813_v3 = vsel %vm2989_vm4, %v798_v60, -1e+30  ;;  %v810_v11 = vsel %vm2989_vm4, %v795_v8, -1e+30 }
 0x28e   :  { %v710_v0 = vpop.f32.mrf.mxu0  ;;  %v835_v7 = vsel %vm177_vm3, %v813_v3, -inf  ;;  %v826_v12 = vsel %vm177_vm3, %v810_v11, -inf }
 0x28f   :  { %830 = vmax.xlane.f32.xlu0 %v829_v1  ;;  %v797_v10 = vmul.f32 0.35355338, %v710_v0 }
 0x290   :  { %v2590_v4 = vpop.f32.mrf.mxu0 }
 0x291   :  { %v812_v13 = vsel %vm2989_vm4, %v797_v10, -1e+30 }
 0x292   :  { %v832_v14 = vsel %vm177_vm3, %v812_v13, -inf }
 0x293   :  { %836 = vmax.xlane.f32.xlu0 %v835_v7 }
 0x294   :  { %902 = vrot.lane.b32.xlu1 %v2903_v9, %s2800_s17 }
 0x298   :  { %1054 = vrot.lane.b32.xlu1 %v2919_v19, %s2800_s17 }
 0x29e   :  { %v816_v9 = vpop.xlane.xlu0 %815 }
 0x29f   :  { %v838_v15 = vsub.f32 %v806_v38, %v816_v9 }
 0x2a9   :  { %978 = vrot.lane.b32.xlu0 %v2911_v16, %s2800_s17  ;;  %v846_v16 = vmul.f32 1.442695, %v838_v15 }
 0x2ab   :  { %2732 = vpow2.f32 %v846_v16 }
 0x2b8   :  { %v3028_v17 = vpop.eup %2732 }
 0x2b9   :  { %v862_v19 = vsel %vm177_vm3, %v3028_v17, 0.0 }
 0x2bc   :  { %827 = vmax.xlane.f32.xlu1 %v826_v12 }
 0x2c0   :  { %833 = vmax.xlane.f32.xlu1 %v832_v14 }
 0x2d1   :  { %1130 = vrot.lane.b32.xlu1 %v2917_v18, %s2800_s17 }
 0x2f5   :  { %863 = vadd.xlane.f32.xlu1 %v862_v19 }
 0x30c   :  { %v819_v24 = vpop.xlane.xlu1 %818 }
 0x30d   :  { %v839_v18 = vsub.f32 %v2998_v43, %v819_v24 }
 0x30f   :  { %v848_v32 = vmul.f32 1.442695, %v839_v18  ;;  %v1510_v18 = vld [vmem:[%s3255_s2] sm:$0xff] }
 0x310   :  { %v903_v25 = vpop.permute.xlu1 %902  ;;  %v822_v26 = vpop.xlane.xlu0 %821 }
 0x311   :  { %v840_v27 = vsub.f32 %v808_v48, %v822_v26  ;;  %2597 = vmatpush3.msra.mxu0 %v903_v25 }
 0x312   :  { %2606 = vmatprep.subr.mxu0 %v2794_v6 }
 0x313   :  { %v850_v28 = vmul.f32 1.442695, %v840_v27 }
 0x314   :  { %v825_v29 = vpop.xlane.xlu0 %824  ;;  %v1055_v50 = vpop.permute.xlu1 %1054 }
 0x315   :  { %2734 = vpow2.f32 %v850_v28  ;;  %v841_v36 = vsub.f32 %v809_v56, %v825_v29 }
 0x317   :  { %v852_v40 = vmul.f32 1.442695, %v841_v36 }
 0x318   :  { %v831_v30 = vpop.xlane.xlu0 %830 }
 0x319   :  { %v843_v31 = vsub.f32 %v811_v61, %v831_v30  ;;  %v1511_v30 = vld [vmem:[%s3255_s2 + $0x8] sm:$0xff] }
 0x31b   :  { %v856_v33 = vmul.f32 1.442695, %v843_v31  ;;  %v1512_v31 = vld [vmem:[%s3255_s2 + $0x10] sm:$0xff] }
 0x31c   :  { %v837_v34 = vpop.xlane.xlu0 %836 }
 0x31d   :  { %2736 = vpow2.f32 %v856_v33  ;;  %v845_v35 = vsub.f32 %v813_v3, %v837_v34  ;;  %v1514_v34 = vld [vmem:[%s3255_s2 + $0x20] sm:$0xff] }
 0x31e   :  { %2738 = vpow2.f32 %v848_v32 }
 0x31f   :  { %v860_v37 = vmul.f32 1.442695, %v845_v35 }
 0x320   :  { %v979_v38 = vpop.permute.xlu0 %978 }
 0x321   :  { %2602 = vmatpush3.msra.mxu1 %v979_v38  ;;  %2740 = vpow2.f32 %v860_v37  ;;  %v1513_v37 = vld [vmem:[%s3255_s2 + $0x18] sm:$0xff] }
 0x322   :  { %v2735_v39 = vpop.eup %2734  ;;  %2611 = vmatprep.subr.mxu1 %v2794_v6  ;;  %2742 = vpow2.f32 %v852_v40  ;;  %v1515_v40 = vld [vmem:[%s3255_s2 + $0x28] sm:$0xff] }
 0x323   :  { %v868_v41 = vsel %vm177_vm3, %v2735_v39, 0.0 }
 0x324   :  { %869 = vadd.xlane.f32.xlu1 %v868_v41 }
 0x32a   :  { %v3036_v42 = vpop.eup %2736 }
 0x32b   :  { %v877_v43 = vsel %vm177_vm3, %v3036_v42, 0.0  ;;  %v2739_v44 = vpop.eup %2738 }
 0x32c   :  { %878 = vadd.xlane.f32.xlu0 %v877_v43  ;;  %v865_v45 = vsel %vm177_vm3, %v2739_v44, 0.0  ;;  %v1517_v43 = vld [vmem:[%s3255_s2 + $0x38] sm:$0xff] }
 0x32e   :  { %v3041_v46 = vpop.eup %2740 }
 0x32f   :  { %v883_v47 = vsel %vm177_vm3, %v3041_v46, 0.0  ;;  %v2743_v48 = vpop.eup %2742 }
 0x330   :  { %866 = vadd.xlane.f32.xlu0 %v865_v45  ;;  %v871_v49 = vsel %vm177_vm3, %v2743_v48, 0.0 }
 0x334   :  { %884 = vadd.xlane.f32.xlu0 %v883_v47 }
 0x335   :  { %1282 = vrot.lane.b32.xlu1 %v2927_v20, %s2800_s17 }
 0x338   :  { %872 = vadd.xlane.f32.xlu0 %v871_v49 }
 0x345   :  { %v828_v51 = vpop.xlane.xlu1 %827 }
 0x346   :  { %v842_v52 = vsub.f32 %v810_v11, %v828_v51 }
 0x348   :  { %v854_v53 = vmul.f32 1.442695, %v842_v52 }
 0x349   :  { %v834_v54 = vpop.xlane.xlu1 %833 }
 0x34a   :  { %2744 = vpow2.f32 %v854_v53  ;;  %v844_v55 = vsub.f32 %v812_v13, %v834_v54 }
 0x34c   :  { %v858_v56 = vmul.f32 1.442695, %v844_v55 }
 0x34d   :  { %v1131_v60 = vpop.permute.xlu1 %1130 }
 0x34e   :  { %2746 = vpow2.f32 %v858_v56  ;;  %1206 = vrot.lane.b32.xlu0 %v2933_v21, %s2800_s17 }
 0x352   :  { %1358 = vrot.lane.b32.xlu0 %v2943_v23, %s2800_s17 }
 0x357   :  { %v2745_v57 = vpop.eup %2744 }
 0x358   :  { %v874_v20 = vsel %vm177_vm3, %v2745_v57, 0.0 }
 0x359   :  { %875 = vadd.xlane.f32.xlu1 %v874_v20 }
 0x35b   :  { %v3053_v58 = vpop.eup %2746 }
 0x35c   :  { %v880_v59 = vsel %vm177_vm3, %v3053_v58, 0.0 }
 0x35d   :  { %881 = vadd.xlane.f32.xlu1 %v880_v59 }
 0x36e   :  { %1434 = vrot.lane.b32.xlu1 %v2939_v22, %s2800_s17  ;;  %s2772_s17 = scalar_lea.vmem %s2414_s16, 256 }
 0x36f   :  { %p2773_p0 = scmp.ne.s32.totalorder %s2414_s16, %s2772_s17  ;;  %p2778_p2 = scmp.lt.s32.totalorder %s2772_s17, %s2772_s17 }
 0x371   :  { %p2779_p3 = por %p2778_p2, %p2777_p1 }
 0x373   :  { %p2780_p4 = pnand %p2779_p3, %p2773_p0 }
 0x37e   :  { %v864_v61 = vpop.xlane.xlu1 %863 }
 0x37f   :  { %2748 = vrcp.f32 %v864_v61 }
 0x38c   :  { %v2749_v21 = vpop.eup %2748 }
 0x38d   :  { %v887_v62 = vmul.f32 %v2749_v21, %v3028_v17 }
 0x38f   :  { %2599 = vmatmul.mubr.msk.f32.vlgmr.msra.gmra.mxu0 %vm177_vm3, %v887_v62 }
 0x390   :  { %2607 = vmatpush3.msra.mxu0 %v1055_v50  ;;  %2608 = vmatprep.mubr.msk.f32.mxu0 %vm2797_vm2, %v2794_v6 }
 0x391   :  { %2616 = vmatprep.subr.mxu0 %v2794_v6 }
 0x3ad   :  { %v870_v23 = vpop.xlane.xlu1 %869 }
 0x3ae   :  { %2750 = vrcp.f32 %v870_v23 }
 0x3b1   :  { %v1283_v14 = vpop.permute.xlu1 %1282 }
 0x3b5   :  { %v879_v63 = vpop.xlane.xlu0 %878 }
 0x3b9   :  { %v867_v0 = vpop.xlane.xlu0 %866 }
 0x3ba   :  { %2752 = vrcp.f32 %v867_v0 }
 0x3bb   :  { %v2751_v22 = vpop.eup %2750 }
 0x3bc   :  { %v891_v1 = vmul.f32 %v2751_v22, %v2735_v39 }
 0x3bd   :  { %v885_v3 = vpop.xlane.xlu0 %884 }
 0x3be   :  { %2609 = vmatmul.mubr.msk.f32.vlgmr.msra.gmra.mxu0 %vm177_vm3, %v891_v1 }
 0x3bf   :  { %2618 = vmatprep.mubr.msk.f32.mxu0 %vm2797_vm2, %v2794_v6 }
 0x3c1   :  { %v873_v4 = vpop.xlane.xlu0 %872 }
 0x3c2   :  { %2754 = vrcp.f32 %v873_v4 }
 0x3c3   :  { %2756 = vrcp.f32 %v879_v63 }
 0x3c4   :  { %2758 = vrcp.f32 %v885_v3 }
 0x3c5   :  { %v1207_v7 = vpop.permute.xlu0 %1206 }
 0x3c6   :  { %2617 = vmatpush3.msra.mxu0 %v1207_v7 }
 0x3c7   :  { %v2753_v8 = vpop.eup %2752  ;;  %2626 = vmatprep.subr.mxu0 %v2794_v6 }
 0x3c8   :  { %v889_v10 = vmul.f32 %v2753_v8, %v2739_v44 }
 0x3c9   :  { %v1359_v27 = vpop.permute.xlu0 %1358 }
 0x3ca   :  { %2604 = vmatmul.mubr.msk.f32.vlgmr.msra.gmra.mxu1 %vm177_vm3, %v889_v10 }
 0x3cb   :  { %2612 = vmatpush3.msra.mxu1 %v1131_v60  ;;  %2613 = vmatprep.mubr.msk.f32.mxu1 %vm2797_vm2, %v2794_v6 }
 0x3cc   :  { %2621 = vmatprep.subr.mxu1 %v2794_v6 }
 0x3cf   :  { %v2755_v11 = vpop.eup %2754 }
 0x3d0   :  { %v893_v12 = vmul.f32 %v2755_v11, %v2743_v48  ;;  %v2757_v13 = vpop.eup %2756  ;;  %v1516_v48 = vld [vmem:[%s3255_s2 + $0x30] sm:$0xff] }
 0x3d1   :  { %v897_v9 = vmul.f32 %v2757_v13, %v3036_v42  ;;  %v2759_v17 = vpop.eup %2758 }
 0x3d2   :  { %2614 = vmatmul.mubr.msk.f32.vlgmr.msra.gmra.mxu1 %vm177_vm3, %v893_v12  ;;  %v901_v24 = vmul.f32 %v2759_v17, %v3041_v46 }
 0x3d3   :  { %2622 = vmatpush3.msra.mxu1 %v1283_v14  ;;  %2623 = vmatprep.mubr.msk.f32.mxu1 %vm2797_vm2, %v2794_v6 }
 0x3d4   :  { %2631 = vmatprep.subr.mxu1 %v2794_v6 }
 0x3d6   :  { %2624 = vmatmul.mubr.msk.f32.vlgmr.msra.gmra.mxu1 %vm177_vm3, %v897_v9 }
 0x3d7   :  { %2633 = vmatprep.mubr.msk.f32.mxu1 %vm2797_vm2, %v2794_v6 }
 0x3e2   :  { %v876_v15 = vpop.xlane.xlu1 %875 }
 0x3e3   :  { %2760 = vrcp.f32 %v876_v15 }
 0x3e6   :  { %v882_v16 = vpop.xlane.xlu1 %881 }
 0x3e7   :  { %2762 = vrcp.f32 %v882_v16 }
 0x3ea   :  { %v1435_v19 = vpop.permute.xlu1 %1434 }
 0x3eb   :  { %2632 = vmatpush3.msra.mxu1 %v1435_v19 }
 0x3ec   :  { %2634 = vmatmul.mubr.msk.f32.vlgmr.msra.gmra.mxu1 %vm177_vm3, %v901_v24  ;;  %2641 = vmatprep.subr.mxu1 %v2794_v6 }
 0x3ed   :  { %2643 = vmatprep.mubr.msk.f32.mxu1 %vm2797_vm2, %v2794_v6  ;;  %2642 = vmatpush3.msra.mxu1 %v1511_v30  ;;  %v2171_v30 = vld [vmem:[%s3259_s6 + $0x18] sm:$0xff] }
 0x3ee   :  { %2651 = vmatprep.subr.mxu1 %v2794_v6 }
 0x3f0   :  { %v2761_v25 = vpop.eup %2760 }
 0x3f1   :  { %v895_v26 = vmul.f32 %v2761_v25, %v2745_v57 }
 0x3f3   :  { %2619 = vmatmul.mubr.msk.f32.vlgmr.msra.gmra.mxu0 %vm177_vm3, %v895_v26 }
 0x3f4   :  { %v2763_v28 = vpop.eup %2762  ;;  %2627 = vmatpush3.msra.mxu0 %v1359_v27  ;;  %2628 = vmatprep.mubr.msk.f32.mxu0 %vm2797_vm2, %v2794_v6 }
 0x3f5   :  { %v899_v29 = vmul.f32 %v2763_v28, %v3053_v58  ;;  %2636 = vmatprep.subr.mxu0 %v2794_v6 }
 0x3f7   :  { %2629 = vmatmul.mubr.msk.f32.vlgmr.msra.gmra.mxu0 %vm177_vm3, %v899_v29 }
 0x3f8   :  { %2637 = vmatpush3.msra.mxu0 %v1510_v18  ;;  %2638 = vmatprep.mubr.msk.f32.mxu0 %vm2797_vm2, %v2794_v6 }
 0x3f9   :  { %2646 = vmatprep.subr.mxu0 %v2794_v6 }
 0x44f   :  { %v974_v32 = vpop.f32.mrf.mxu0 }
 0x450   :  { %2639 = vmatmul.mubr.msk.f32.vlgmr.msra.gmra.mxu0 %vm177_vm3, %v974_v32  ;;  %v2169_v32 = vld [vmem:[%s3259_s6 + $0x8] sm:$0xff] }
 0x451   :  { %v2600_v33 = vpop.f32.mrf.mxu0  ;;  %2647 = vmatpush3.msra.mxu0 %v1512_v31  ;;  %2648 = vmatprep.mubr.msk.f32.mxu0 %vm2797_vm2, %v2794_v6  ;;  %v2170_v31 = vld [vmem:[%s3259_s6 + $0x10] sm:$0xff] }
 0x452   :  { %2656 = vmatprep.subr.mxu0 %v2794_v6  ;;  %v2168_v33 = vld [vmem:[%s3259_s6] sm:$0xff] }
 0x47e   :  { %v1126_v35 = vpop.f32.mrf.mxu0 }
 0x47f   :  { %2649 = vmatmul.mubr.msk.f32.vlgmr.msra.gmra.mxu0 %vm177_vm3, %v1126_v35  ;;  %v2276_v35 = vld [vmem:[%s3261_s8 + $0x70] sm:$0xff] }
 0x480   :  { %v2610_v36 = vpop.f32.mrf.mxu0  ;;  %2657 = vmatpush3.msra.mxu0 %v1514_v34  ;;  %2658 = vmatprep.mubr.msk.f32.mxu0 %vm2797_vm2, %v2794_v6  ;;  %v2277_v34 = vld [vmem:[%s3261_s8 + $0x78] sm:$0xff] }
 0x481   :  { %2666 = vmatprep.subr.mxu0 %v2794_v6  ;;  %v2275_v36 = vld [vmem:[%s3261_s8 + $0x68] sm:$0xff] }
 0x48a   :  { %v1050_v38 = vpop.f32.mrf.mxu1 }
 0x48b   :  { %2644 = vmatmul.mubr.msk.f32.vlgmr.msra.gmra.mxu1 %vm177_vm3, %v1050_v38  ;;  %v2273_v38 = vld [vmem:[%s3261_s8 + $0x58] sm:$0xff] }
 0x48c   :  { %v2605_v39 = vpop.f32.mrf.mxu1  ;;  %2652 = vmatpush3.msra.mxu1 %v1513_v37  ;;  %2653 = vmatprep.mubr.msk.f32.mxu1 %vm2797_vm2, %v2794_v6  ;;  %v2274_v37 = vld [vmem:[%s3261_s8 + $0x60] sm:$0xff] }
 0x48d   :  { %2661 = vmatprep.subr.mxu1 %v2794_v6  ;;  %v2272_v39 = vld [vmem:[%s3261_s8 + $0x50] sm:$0xff] }
 0x492   :  { %v1202_v41 = vpop.f32.mrf.mxu1 }
 0x493   :  { %2654 = vmatmul.mubr.msk.f32.vlgmr.msra.gmra.mxu1 %vm177_vm3, %v1202_v41  ;;  %v2270_v41 = vld [vmem:[%s3261_s8 + $0x40] sm:$0xff] }
 0x494   :  { %v2615_v42 = vpop.f32.mrf.mxu1  ;;  %2662 = vmatpush3.msra.mxu1 %v1515_v40  ;;  %2663 = vmatprep.mubr.msk.f32.mxu1 %vm2797_vm2, %v2794_v6  ;;  %v2271_v40 = vld [vmem:[%s3261_s8 + $0x48] sm:$0xff] }
 0x495   :  { %2671 = vmatprep.subr.mxu1 %v2794_v6  ;;  %v2269_v42 = vld [vmem:[%s3261_s8 + $0x38] sm:$0xff] }
 0x496   :  { %v1354_v44 = vpop.f32.mrf.mxu1 }
 0x497   :  { %2664 = vmatmul.mubr.msk.f32.vlgmr.msra.gmra.mxu1 %vm177_vm3, %v1354_v44  ;;  %v2267_v44 = vld [vmem:[%s3261_s8 + $0x28] sm:$0xff] }
 0x498   :  { %v2625_v45 = vpop.f32.mrf.mxu1  ;;  %2672 = vmatpush3.msra.mxu1 %v1517_v43  ;;  %2673 = vmatprep.mubr.msk.f32.mxu1 %vm2797_vm2, %v2794_v6  ;;  %v2268_v43 = vld [vmem:[%s3261_s8 + $0x30] sm:$0xff] }
 0x499   :  { %2687 = vmatprep.subr.mxu1 %v2277_v34  ;;  %v2266_v45 = vld [vmem:[%s3261_s8 + $0x20] sm:$0xff] }
 0x4ac   :  { %v1506_v46 = vpop.f32.mrf.mxu1 }
 0x4ad   :  { %2674 = vmatmul.mubr.msk.f32.vlgmr.msra.gmra.mxu1 %vm177_vm3, %v1506_v46 }
 0x4ae   :  { %v2635_v47 = vpop.f32.mrf.mxu1  ;;  %2688 = vmatpush3.msra.mxu1 %v2277_v34 }
 0x4af   :  { %2689 = vmatprep.subr.mxu1 %v2276_v35 }
 0x4b0   :  { %2690 = vmatpush3.msra.mxu1 %v2276_v35  ;;  %v2465_v35 = vld [vmem:[%s3263_s10] ss:$0 sm:$0xff] }
 0x4b1   :  { %2691 = vmatprep.subr.mxu1 %v2275_v36 }
 0x4b2   :  { %2692 = vmatpush3.msra.mxu1 %v2275_v36 }
 0x4b3   :  { %v1278_v49 = vpop.f32.mrf.mxu0  ;;  %2693 = vmatprep.subr.mxu1 %v2274_v37 }
 0x4b4   :  { %2659 = vmatmul.mubr.msk.f32.vlgmr.msra.gmra.mxu0 %vm177_vm3, %v1278_v49  ;;  %2694 = vmatpush3.msra.mxu1 %v2274_v37 }
 0x4b5   :  { %v2620_v50 = vpop.f32.mrf.mxu0  ;;  %2667 = vmatpush3.msra.mxu0 %v1516_v48  ;;  %2668 = vmatprep.mubr.msk.f32.mxu0 %vm2797_vm2, %v2794_v6  ;;  %v2458_v6 = vld [vmem:[%s3256_s3] ss:$0 sm:$0xff] }
 0x4b6   :  { %2676 = vmatprep.subr.mxu0 %v2171_v30  ;;  %2695 = vmatprep.subr.mxu1 %v2273_v38  ;;  %v2459_v50 = vld [vmem:[%s3257_s4] ss:$0 sm:$0xff] }
 0x4b7   :  { %v1430_v51 = vpop.f32.mrf.mxu0  ;;  %2696 = vmatpush3.msra.mxu1 %v2273_v38  ;;  %v2466_v38 = vld [vmem:[%s3264_s11] ss:$0 sm:$0xff] }
 0x4b8   :  { %2669 = vmatmul.mubr.msk.f32.vlgmr.msra.gmra.mxu0 %vm177_vm3, %v1430_v51  ;;  %2697 = vmatprep.subr.mxu1 %v2272_v39 }
 0x4b9   :  { %v2630_v52 = vpop.f32.mrf.mxu0  ;;  %2677 = vmatpush3.msra.mxu0 %v2171_v30  ;;  %2698 = vmatpush3.msra.mxu1 %v2272_v39 }
 0x4ba   :  { %2678 = vmatprep.subr.mxu0 %v2170_v31  ;;  %2699 = vmatprep.subr.mxu1 %v2271_v40  ;;  %v2460_v52 = vld [vmem:[%s3258_s5] ss:$0 sm:$0xff] }
 0x4bb   :  { %2679 = vmatpush3.msra.mxu0 %v2170_v31  ;;  %2700 = vmatpush3.msra.mxu1 %v2271_v40 }
 0x4bc   :  { %2680 = vmatprep.subr.mxu0 %v2169_v32  ;;  %2701 = vmatprep.subr.mxu1 %v2270_v41 }
 0x4bd   :  { %2681 = vmatpush3.msra.mxu0 %v2169_v32  ;;  %2702 = vmatpush3.msra.mxu1 %v2270_v41 }
 0x4be   :  { %2682 = vmatprep.subr.mxu0 %v2168_v33  ;;  %2703 = vmatprep.subr.mxu1 %v2269_v42 }
 0x4bf   :  { %2683 = vmatpush3.msra.mxu0 %v2168_v33  ;;  %2704 = vmatpush3.msra.mxu1 %v2269_v42 }
 0x4c0   :  { %2705 = vmatprep.subr.mxu1 %v2268_v43 }
 0x4c1   :  { %2706 = vmatpush3.msra.mxu1 %v2268_v43 }
 0x4c2   :  { %2707 = vmatprep.subr.mxu1 %v2267_v44 }
 0x4c3   :  { %2708 = vmatpush3.msra.mxu1 %v2267_v44 }
 0x4c4   :  { %2709 = vmatprep.subr.mxu1 %v2266_v45 }
 0x4c5   :  { %2710 = vmatpush3.msra.mxu1 %v2266_v45 }
 0x510   :  { %v1587_v53 = vpop.f32.mrf.mxu0 }
 0x512   :  { %v2640_v54 = vpop.f32.mrf.mxu0 }
 0x53f   :  { %v1733_v55 = vpop.f32.mrf.mxu0 }
 0x541   :  { %v2650_v56 = vpop.f32.mrf.mxu0 }
 0x54b   :  { %v1660_v57 = vpop.f32.mrf.mxu1 }
 0x54c   :  { %v2102_v58 = vadd.f32 %v1660_v57, %v1587_v53 }
 0x54d   :  { %v2645_v20 = vpop.f32.mrf.mxu1 }
 0x54e   :  { %v2103_v59 = vadd.f32 %v2102_v58, %v1733_v55 }
 0x553   :  { %v1806_v60 = vpop.f32.mrf.mxu1 }
 0x554   :  { %v2104_v61 = vadd.f32 %v2103_v59, %v1806_v60 }
 0x555   :  { %v2655_v21 = vpop.f32.mrf.mxu1 }
 0x556   :  { %2105 = vst.msk [vmem:[#allocation3] sm:$0xff] %vm48_vm0, %v2104_v61  ;;  %v2265_v61 = vld [vmem:[%s3261_s8 + $0x18] sm:$0xff]  ;;  %v2264_v21 = vld [vmem:[%s3261_s8 + $0x10] sm:$0xff] }
 0x557   :  { %v1952_v62 = vpop.f32.mrf.mxu1  ;;  %2711 = vmatprep.subr.mxu1 %v2265_v61 }
 0x558   :  { %2712 = vmatpush3.msra.mxu1 %v2265_v61 }
 0x559   :  { %v2665_v23 = vpop.f32.mrf.mxu1  ;;  %2713 = vmatprep.subr.mxu1 %v2264_v21 }
 0x55a   :  { %2714 = vmatpush3.msra.mxu1 %v2264_v21  ;;  %v2262_v23 = vld [vmem:[%s3261_s8] sm:$0xff] }
 0x55d   :  { %v2110_v63 = vld [vmem:[#allocation3] sm:$0xff] }
 0x55e   :  { %v2119_v0 = vadd.f32 %v2458_v6, %v2110_v63 }
 0x560   :  { %v2121_v22 = vadd.f32 %v2119_v0, %v2878_v2 }
 0x562   :  { %v2125_v1 = vsel %vm48_vm0, %v2121_v22, 0.0 }
 0x563   :  { %2126 = vadd.xlane.f32.xlu0 %v2125_v1 }
 0x56d   :  { %v2098_v3 = vpop.f32.mrf.mxu1 }
 0x56f   :  { %v2675_v4 = vpop.f32.mrf.mxu1 }
 0x574   :  { %v1879_v7 = vpop.f32.mrf.mxu0 }
 0x575   :  { %v2106_v10 = vadd.f32 %v1952_v62, %v1879_v7  ;;  %v2263_v62 = vld [vmem:[%s3261_s8 + $0x8] sm:$0xff]  ;;  %v2464_v7 = vld [vmem:[%s3262_s9] ss:$0 sm:$0xff] }
 0x576   :  { %v2660_v8 = vpop.f32.mrf.mxu0  ;;  %2715 = vmatprep.subr.mxu1 %v2263_v62 }
 0x577   :  { %2716 = vmatpush3.msra.mxu1 %v2263_v62 }
 0x578   :  { %v2025_v11 = vpop.f32.mrf.mxu0  ;;  %2717 = vmatprep.subr.mxu1 %v2262_v23 }
 0x579   :  { %v2107_v12 = vadd.f32 %v2106_v10, %v2025_v11  ;;  %2718 = vmatpush3.msra.mxu1 %v2262_v23 }
 0x57a   :  { %v2670_v13 = vpop.f32.mrf.mxu0 }
 0x57b   :  { %v2108_v14 = vadd.f32 %v2107_v12, %v2098_v3 }
 0x57d   :  { %2109 = vst.msk [vmem:[#allocation3 + $0x8] sm:$0xff] %vm48_vm0, %v2108_v14 }
 0x584   :  { %v2111_v9 = vld [vmem:[#allocation3 + $0x8] sm:$0xff] }
 0x585   :  { %v2120_v15 = vadd.f32 %v2458_v6, %v2111_v9  ;;  %v2461_v6 = vld [vmem:[%s3260_s7] ss:$0 sm:$0xff] }
 0x587   :  { %v2122_v16 = vadd.f32 %v2120_v15, %v2891_v5 }
 0x589   :  { %v2128_v2 = vsel %vm48_vm0, %v2122_v16, 0.0 }
 0x58a   :  { %2129 = vadd.xlane.f32.xlu1 %v2128_v2 }
 0x5ec   :  { %v2127_v17 = vpop.xlane.xlu0 %2126 }
 0x5ed   :  { %v2132_v19 = vmul.f32 0.03125, %v2127_v17 }
 0x5ef   :  { %v3152_v24 = vsub.f32 %v2121_v22, %v2132_v19 }
 0x5f1   :  { %v2136_v25 = vmul.f32 %v3152_v24, %v3152_v24 }
 0x5f3   :  { %v2138_v26 = vsel %vm48_vm0, %v2136_v25, 0.0 }
 0x5f4   :  { %2139 = vadd.xlane.f32.xlu0 %v2138_v26 }
 0x613   :  { %v2130_v27 = vpop.xlane.xlu1 %2129 }
 0x614   :  { %v2133_v28 = vmul.f32 0.03125, %v2130_v27 }
 0x616   :  { %v3157_v29 = vsub.f32 %v2122_v16, %v2133_v28 }
 0x618   :  { %v2137_v5 = vmul.f32 %v3157_v29, %v3157_v29 }
 0x61a   :  { %v2141_v18 = vsel %vm48_vm0, %v2137_v5, 0.0 }
 0x61b   :  { %2142 = vadd.xlane.f32.xlu0 %v2141_v18 }
 0x67d   :  { %v2140_v46 = vpop.xlane.xlu0 %2139 }
 0x67e   :  { %v2144_v47 = vmul.f32 0.03125, %v2140_v46 }
 0x680   :  { %v2146_v48 = vadd.f32 1e-05, %v2144_v47 }
 0x682   :  { %2764 = vrsqrt.f32 %v2146_v48 }
 0x68f   :  { %v2765_v49 = vpop.eup %2764 }
 0x690   :  { %v2150_v51 = vmul.f32 %v2765_v49, %v3152_v24 }
 0x692   :  { %v2158_v53 = vmul.f32 %v2459_v50, %v2150_v51 }
 0x694   :  { %v2166_v54 = vadd.f32 %v2460_v52, %v2158_v53 }
 0x696   :  { %2684 = vmatprep.mubr.msk.f32.mxu0 %vm48_vm0, %v2166_v54 }
 0x6a4   :  { %v2143_v55 = vpop.xlane.xlu0 %2142 }
 0x6a5   :  { %v2145_v56 = vmul.f32 0.03125, %v2143_v55 }
 0x6a7   :  { %v2147_v57 = vadd.f32 1e-05, %v2145_v56 }
 0x6a9   :  { %2766 = vrsqrt.f32 %v2147_v57 }
 0x6b6   :  { %v2767_v20 = vpop.eup %2766 }
 0x6b7   :  { %v2151_v58 = vmul.f32 %v2767_v20, %v3157_v29 }
 0x6b9   :  { %v2159_v59 = vmul.f32 %v2459_v50, %v2151_v58 }
 0x6bb   :  { %v2167_v60 = vadd.f32 %v2460_v52, %v2159_v59 }
 0x6bd   :  { %2685 = vmatmul.mubr.msk.f32.vlgmr.msra.gmra.mxu0 %vm48_vm0, %v2167_v60 }
 0x77d   :  { %v2686_v63 = vpop.f32.mrf.mxu0 }
 0x77e   :  { %v2257_v0 = vadd.f32 %v2686_v63, %v2461_v6 }
 0x77f   :  { %v2251_v22 = vpop.f32.mrf.mxu0 }
 0x780   :  { %v2252_v1 = vadd.f32 %v2461_v6, %v2251_v22  ;;  %v2261_v4 = vmax.f32 %v2257_v0, 0.0 }
 0x782   :  { %v2260_v3 = vmax.f32 %v2252_v1, 0.0 }
 0x784   :  { %2719 = vmatprep.mubr.f32.mxu1 %v2260_v3 }
 0x785   :  { %2720 = vmatmul.mubr.f32.vlgmr.msra.gmra.mxu1 %v2261_v4 }
 0x845   :  { %v2721_v8 = vpop.f32.mrf.mxu1 }
 0x846   :  { %v2357_v10 = vadd.f32 %v2721_v8, %v2464_v7 }
 0x847   :  { %v2351_v11 = vpop.f32.mrf.mxu1 }
 0x848   :  { %v2352_v12 = vadd.f32 %v2464_v7, %v2351_v11  ;;  %v2361_v13 = vadd.f32 %v2357_v10, %v2167_v60 }
 0x84a   :  { %v2367_v14 = vsel %vm48_vm0, %v2361_v13, 0.0  ;;  %v2360_v9 = vadd.f32 %v2352_v12, %v2166_v54 }
 0x84b   :  { %2368 = vadd.xlane.f32.xlu0 %v2367_v14 }
 0x84c   :  { %v2364_v15 = vsel %vm48_vm0, %v2360_v9, 0.0 }
 0x84d   :  { %2365 = vadd.xlane.f32.xlu1 %v2364_v15 }
 0x8d4   :  { %v2369_v16 = vpop.xlane.xlu0 %2368 }
 0x8d5   :  { %v2371_v2 = vmul.f32 0.03125, %v2369_v16 }
 0x8d6   :  { %v2366_v17 = vpop.xlane.xlu1 %2365 }
 0x8d7   :  { %v2373_v19 = vsub.f32 %v2361_v13, %v2371_v2  ;;  %v2370_v24 = vmul.f32 0.03125, %v2366_v17 }
 0x8d9   :  { %v2372_v25 = vsub.f32 %v2360_v9, %v2370_v24  ;;  %v2375_v26 = vmul.f32 %v2373_v19, %v2373_v19 }
 0x8db   :  { %v2379_v27 = vsel %vm48_vm0, %v2375_v26, 0.0  ;;  %v2374_v28 = vmul.f32 %v2372_v25, %v2372_v25 }
 0x8dc   :  { %2380 = vadd.xlane.f32.xlu0 %v2379_v27 }
 0x8dd   :  { %v2376_v29 = vsel %vm48_vm0, %v2374_v28, 0.0 }
 0x8de   :  { %2377 = vadd.xlane.f32.xlu1 %v2376_v29 }
 0x965   :  { %v2381_v5 = vpop.xlane.xlu0 %2380 }
 0x966   :  { %v2383_v18 = vmul.f32 0.03125, %v2381_v5 }
 0x967   :  { %v2378_v30 = vpop.xlane.xlu1 %2377 }
 0x968   :  { %v2385_v31 = vadd.f32 1e-05, %v2383_v18  ;;  %v2382_v32 = vmul.f32 0.03125, %v2378_v30 }
 0x96a   :  { %2768 = vrsqrt.f32 %v2385_v31  ;;  %v2384_v33 = vadd.f32 1e-05, %v2382_v32 }
 0x96c   :  { %2770 = vrsqrt.f32 %v2384_v33 }
 0x977   :  { %v2769_v34 = vpop.eup %2768 }
 0x978   :  { %v2389_v36 = vmul.f32 %v2769_v34, %v2373_v19 }
 0x979   :  { %v2771_v37 = vpop.eup %2770 }
 0x97a   :  { %v2388_v39 = vmul.f32 %v2771_v37, %v2372_v25  ;;  %v2397_v40 = vmul.f32 %v2465_v35, %v2389_v36 }
 0x97c   :  { %v2396_v41 = vmul.f32 %v2465_v35, %v2388_v39  ;;  %v2405_v42 = vadd.f32 %v2466_v38, %v2397_v40 }
 0x97e   :  { %v2404_v43 = vadd.f32 %v2466_v38, %v2396_v41  ;;  %2407 = vst.msk [vmem:[#allocation4 + $0x8] sm:$0xff] %vm48_vm0, %v2405_v42 }
 0x980   :  { %2406 = vst.msk [vmem:[#allocation4] sm:$0xff] %vm48_vm0, %v2404_v43 }
 0x981   :  { %2783 = shalt.err (!%p2780_p4)
}
 0x982   :  { %s2802_s10 = smov 128   ;;  %s2803_s11 = smov 8  }
 0x983   :  { %2419 = dma.vmem_to_hbm [thread:$0]  %s2414_s16, 256, %s3265_s12, [#allocation5], %s2802_s10, %s2802_s10, %s2803_s11  }
 0x984   :  { %2792 = dma.done.wait [#allocation5], 256  }
 0x985   :  { %2793 = vsyncadd [#allocation5], 4294967040 }
 0x986   :  { %2423 = vsyncpa [#allocation5], 1 }

</bundles_post_ra>
